<compile_context>
chip_gen: v6e
topology: v6e:2x2x1
jax: 0.10.0
libtpu: 0.0.40
codegen_flags: <defaults>
</compile_context>

<pallas_src>
import jax
import jax.numpy as jnp
from jax.experimental import pallas as pl
from jax.experimental.pallas import tpu as pltpu


def _round_up(n, m):
    return (n + m - 1) // m * m


def _disc_kernel(x_ref, w_ref, b_ref, o_ref):
    # x_ref: (tm, H)    streamed batch tile (double-buffered)
    # w_ref: (H, Lp)    fused, lane-padded weights (VMEM-resident, Buffered(1))
    # b_ref: (1, Lp)    fused, lane-padded bias (f32)
    # o_ref: (tm, Lout) sigmoid(logits) tile, Lout in {E, Lp}, dtype = x.dtype
    z = jnp.dot(x_ref[...], w_ref[...], preferred_element_type=jnp.float32)
    z = z + b_ref[...]                              # (tm, Lp) + (1, Lp)
    # Exact sigmoid (keeps parity with torch.sigmoid up to matmul precision).
    # The VPU divide is free slack here (kernel is HBM-bound); switch to
    # pl.reciprocal(1.0 + jnp.exp(-z), approx=True) to move it onto the EUP if
    # the epilogue ever lands on the critical path.
    s = 1.0 / (1.0 + jnp.exp(-z))
    # Narrow (masked) store when the output was chosen un-padded; identity
    # slice when lane-dense.
    o_ref[...] = s[:, : o_ref.shape[1]].astype(o_ref.dtype)


@jax.jit
def discriminator_forward(x, weights, biases):
    """x: (B, H); weights: (E, H) = torch Linear(H, 1).weight stacked over the
    E exits; biases: (E,).  Returns a list of E arrays, each (B, 1), equal to
    sigmoid(x @ weights[e].T + biases[e]) == Discriminator.forward(x)[e].

    Note: weights are cast to x.dtype before the matmul (e.g. bf16 if x is
    bf16); accumulation stays f32 via preferred_element_type."""
    B, H = x.shape
    E, H2 = weights.shape
    assert H == H2 and biases.shape == (E,)

    LANE = 128
    itemsize = jnp.dtype(x.dtype).itemsize
    out_dtype = x.dtype
    out_itemsize = jnp.dtype(out_dtype).itemsize

    # Weight slab is always lane-dense (padded to 128) so the MXU sees a wide,
    # well-formed N dim.  The *output* is narrowed to E when H is small enough
    # that a padded output would be a significant fraction of per-row traffic.
    Lp = _round_up(E, LANE)
    use_narrow_out = H * itemsize < 8 * Lp * out_itemsize
    Lout = E if use_narrow_out else Lp

    # Fused weight (H, Lp) / bias (1, Lp) slabs via pad (no scatter-into-zeros).
    w_all = weights.T.astype(x.dtype)
    b_all = biases.astype(jnp.float32).reshape(1, E)
    if Lp > E:
        w_all = jnp.pad(w_all, ((0, 0), (0, Lp - E)))
        b_all = jnp.pad(b_all, ((0, 0), (0, Lp - E)))

    # ---- Batch tile selection (mem-bound: biggest tile that fits VMEM) -----
    #  * up to 1024 rows (tiled-add data: ~85% of HBM roofline vs ~63% at 256)
    #  * >= 2 grid steps when possible so v7x megacore uses both TensorCores
    #  * explicit VMEM working-set budget, conservative across v5e/v6e/v7x.
    #    (Extremely large H*Lp slabs would need a K-tiled grid; not handled.)
    TM_MAX = 1024
    VMEM_BUDGET = 40 * 1024 * 1024
    fixed_bytes = H * Lp * itemsize + 2 * Lp * 4                 # weights(x1)+bias(x2)
    per_row_bytes = 2 * H * itemsize + 2 * Lout * out_itemsize   # x + out, double-buffered
    tm_fit = max(8, ((VMEM_BUDGET - fixed_bytes) // per_row_bytes) // 8 * 8)
    tm_split = _round_up(max(1, pl.cdiv(B, 2)), 8)               # >= 2 steps when B allows
    tm = max(8, min(TM_MAX, tm_fit, tm_split))

    Bp = _round_up(B, tm)
    x_p = x if Bp == B else jnp.pad(x, ((0, Bp - B), (0, 0)))

    working_set = fixed_bytes + per_row_bytes * tm
    vmem_limit = int(min(48 * 1024 * 1024,
                         max(32 * 1024 * 1024, int(1.25 * working_set))))

    cost = pl.CostEstimate(
        flops=2 * Bp * H * Lp,
        transcendentals=Bp * Lp,
        bytes_accessed=(itemsize * (Bp * H + H * Lp) + 4 * Lp
                        + out_itemsize * Bp * Lout),
    )

    out = pl.pallas_call(
        _disc_kernel,
        out_shape=jax.ShapeDtypeStruct((Bp, Lout), out_dtype),
        grid=(Bp // tm,),
        in_specs=[
            pl.BlockSpec((tm, H), lambda i: (i, 0)),                 # streamed x tile
            pl.BlockSpec((H, Lp), lambda i: (0, 0),
                         pipeline_mode=pl.Buffered(1)),              # resident weights
            pl.BlockSpec((1, Lp), lambda i: (0, 0),
                         pipeline_mode=pl.Buffered(1)),              # resident bias
        ],
        out_specs=pl.BlockSpec((tm, Lout), lambda i: (i, 0)),
        compiler_params=pltpu.CompilerParams(
            dimension_semantics=("parallel",),
            vmem_limit_bytes=vmem_limit),
        cost_estimate=cost,
    )(x_p, w_all, b_all)

    probs = out[:B, :E]                 # drop batch padding (and lane padding)
    return [probs[:, e:e + 1] for e in range(E)]


if __name__ == "__main__":
    def check(num_exits, hidden_size, batch, key):
        kx, kw, kb = jax.random.split(key, 3)
        x = jax.random.normal(kx, (batch, hidden_size), dtype=jnp.float32)
        # One Linear(hidden_size, 1) per exit: weight (1, H) -> stacked (E, H).
        weights = 0.05 * jax.random.normal(
            kw, (num_exits, hidden_size), dtype=jnp.float32)
        biases = 0.01 * jax.random.normal(kb, (num_exits,), dtype=jnp.float32)

        outputs = discriminator_forward(x, weights, biases)
        outputs = [jax.block_until_ready(o) for o in outputs]

        # Reference: plain JAX replica of Discriminator.forward.
        for e in range(num_exits):
            ref = 1.0 / (1.0 + jnp.exp(-(x @ weights[e][:, None] + biases[e])))
            assert outputs[e].shape == (batch, 1)
            # 2e-3 tolerance: the kernel matmul runs at the TPU's default
            # (bf16-pass) MXU precision while the tiny XLA reference may take
            # a full-f32 path.
            assert jnp.allclose(outputs[e], ref, atol=2e-3, rtol=2e-3), \
                f"exit {e} mismatch (H={hidden_size}, B={batch})"

    key = jax.random.PRNGKey(0)
    k1, k2 = jax.random.split(key)
    # Small config: narrow-output path, single grid step, batch padding 4 -> 8.
    check(num_exits=3, hidden_size=32, batch=4, key=k1)
    # Larger hidden size: lane-dense output path, 2 grid steps (megacore on v7x).
    check(num_exits=3, hidden_size=1536, batch=20, key=k2)

    print("KERNEL_OK")
</pallas_src>

<mosaic_0001>
module attributes {stable_mosaic.version = 11 : i64} {
  func.func @_disc_kernel(%arg0: i32, %arg1: memref<8x32xf32, #tpu.memory_space<vmem>>, %arg2: memref<32x128xf32, #tpu.memory_space<vmem>>, %arg3: memref<1x128xf32, #tpu.memory_space<vmem>>, %arg4: memref<8x3xf32, #tpu.memory_space<vmem>>) attributes {dimension_semantics = [#tpu.dimension_semantics<parallel>], iteration_bounds = array<i64: 1>, scalar_prefetch = 0 : i64, scratch_operands = 0 : i64, tpu.core_type = #tpu.core_type<tc>, window_params = [{transform_indices = @transform_0, window_bounds = array<i64: 8, 32>}, {pipeline_mode = #tpu.pipeline_mode<synchronous>, transform_indices = @transform_1, window_bounds = array<i64: 32, 128>}, {pipeline_mode = #tpu.pipeline_mode<synchronous>, transform_indices = @transform_2, window_bounds = array<i64: 1, 128>}, {transform_indices = @transform_3, window_bounds = array<i64: 8, 3>}]} {
    %c0 = arith.constant 0 : index
    %c0_0 = arith.constant 0 : index
    %0 = vector.load %arg1[%c0, %c0_0] : memref<8x32xf32, #tpu.memory_space<vmem>>, vector<8x32xf32>
    %c0_1 = arith.constant 0 : index
    %c0_2 = arith.constant 0 : index
    %1 = vector.load %arg2[%c0_1, %c0_2] : memref<32x128xf32, #tpu.memory_space<vmem>>, vector<32x128xf32>
    %cst = arith.constant dense<0.000000e+00> : vector<8x128xf32>
    %2 = tpu.matmul %0, %1, %cst {dimension_numbers = #tpu.dot_dimension_numbers<[1], [0], [0], [1], [0, 0, 1, 1], [], []>} : vector<8x32xf32>, vector<32x128xf32>, vector<8x128xf32> -> vector<8x128xf32>
    %c0_3 = arith.constant 0 : index
    %c0_4 = arith.constant 0 : index
    %3 = vector.load %arg3[%c0_3, %c0_4] : memref<1x128xf32, #tpu.memory_space<vmem>>, vector<1x128xf32>
    %4 = vector.broadcast %3 : vector<1x128xf32> to vector<8x128xf32>
    %5 = arith.addf %2, %4 : vector<8x128xf32>
    %cst_5 = arith.constant 0.000000e+00 : f32
    %6 = vector.broadcast %cst_5 : f32 to vector<8x128xf32>
    %7 = arith.subf %6, %5 : vector<8x128xf32>
    %8 = math.exp %7 : vector<8x128xf32>
    %cst_6 = arith.constant 1.000000e+00 : f32
    %9 = vector.broadcast %cst_6 : f32 to vector<8x128xf32>
    %10 = arith.addf %9, %8 : vector<8x128xf32>
    %cst_7 = arith.constant 1.000000e+00 : f32
    %11 = vector.broadcast %cst_7 : f32 to vector<8x128xf32>
    %12 = arith.divf %11, %10 : vector<8x128xf32>
    %13 = vector.extract_strided_slice %12 {offsets = [0, 0], sizes = [8, 3], strides = [1, 1]} : vector<8x128xf32> to vector<8x3xf32>
    %c0_8 = arith.constant 0 : index
    %c0_9 = arith.constant 0 : index
    %14 = vector.load %arg4[%c0_8, %c0_9] : memref<8x3xf32, #tpu.memory_space<vmem>>, vector<8x3xf32>
    tpu.vector_store %arg4[%c0_8, %c0_9], %13 {strides = array<i32>} : memref<8x3xf32, #tpu.memory_space<vmem>>, vector<8x3xf32>,
    return
  }
  func.func @transform_0(%arg0: i32) -> (i32, i32) {
    %c0_i32 = arith.constant 0 : i32
    %c0_i32_0 = arith.constant 0 : i32
    return %arg0, %c0_i32 : i32, i32
  }
  func.func @transform_1(%arg0: i32) -> (i32, i32) {
    %c0_i32 = arith.constant 0 : i32
    %c0_i32_0 = arith.constant 0 : i32
    %c0_i32_1 = arith.constant 0 : i32
    return %c0_i32, %c0_i32_0 : i32, i32
  }
  func.func @transform_2(%arg0: i32) -> (i32, i32) {
    %c0_i32 = arith.constant 0 : i32
    %c0_i32_0 = arith.constant 0 : i32
    %c0_i32_1 = arith.constant 0 : i32
    return %c0_i32, %c0_i32_0 : i32, i32
  }
  func.func @transform_3(%arg0: i32) -> (i32, i32) {
    %c0_i32 = arith.constant 0 : i32
    %c0_i32_0 = arith.constant 0 : i32
    return %arg0, %c0_i32 : i32, i32
  }
}

</mosaic_0001>

<bundles_post_ra>
// kernel: discriminator_forward.1
= control target key start
LH: loop header
LB: loop body
LE: loop exit
PB: predicated region body
PF: predicated region fallthrough
CT: control target
= control target key end

     0   :  { %v136_v0 = vmov 0.0   ;;  %vm137_vm0 = vmmov 0   ;;  %vm26_vm1 = vcmask 261120   ;;  %vm106_vm2 = vcmask 23552   ;;  %s179_s1 = inlined_call_operand.vmem [shape: f32[32,128], index: 1, kind: input, shape index: {}]   ;;  %s180_s0 = inlined_call_operand.vmem [shape: f32[8,32], index: 0, kind: input, shape index: {}]   ;;  %s181_s2 = inlined_call_operand.vmem [shape: f32[1,128], index: 2, kind: input, shape index: {}]   ;;  %s182_s3 = inlined_call_operand.vmem [shape: f32[8,3], index: 3, kind: output, shape index: {}]  }
   0x1   :  { %119 = vmatprep.subr.mxu0 %v136_v0  ;;  %v18_v1 = vld [vmem:[%s179_s1 + $0x18] sm:$0xff]  ;;  %v17_v2 = vld [vmem:[%s179_s1 + $0x10] sm:$0xff]  ;;  %127 = vmatprep.mubr.msk.f32.mxu0 %vm137_vm0, %v136_v0  ;;  %v16_v3 = vld [vmem:[%s179_s1 + $0x8] sm:$0xff] }
   0x2   :  { %120 = vmatpush3.msra.mxu0 %v18_v1  ;;  %v15_v4 = vld [vmem:[%s179_s1] sm:$0xff] }
   0x3   :  { %121 = vmatprep.subr.mxu0 %v136_v0  ;;  %v14_v5 = vld [vmem:[%s180_s0] sm:$0xff] }
   0x4   :  { %122 = vmatpush3.msra.mxu0 %v17_v2  ;;  %v112_v6 = vld [vmem:[%s181_s2] ss:$0 sm:$0xff] }
   0x5   :  { %123 = vmatprep.subr.mxu0 %v136_v0 }
   0x6   :  { %124 = vmatpush3.msra.mxu0 %v16_v3 }
   0x7   :  { %125 = vmatprep.subr.mxu0 %v136_v0 }
   0x8   :  { %126 = vmatpush3.msra.mxu0 %v15_v4 }
   0x9   :  { %128 = vmatmul.mubr.msk.f32.vlgmr.msra.gmra.mxu0 %vm26_vm1, %v14_v5 }
  0xc9   :  { %v96_v7 = vpop.f32.mrf.mxu0 }
  0xca   :  { %v97_v8 = vadd.f32 %v112_v6, %v96_v7 }
  0xcb   :  { %v129_v9 = vpop.f32.mrf.mxu0 }
  0xcc   :  { %v100_v10 = vsub.f32 0.0, %v97_v8 }
  0xce   :  { %v101_v11 = vmul.f32 1.442695, %v100_v10 }
  0xd0   :  { %132 = vpow2.f32 %v101_v11 }
  0xdd   :  { %v133_v12 = vpop.eup %132 }
  0xde   :  { %v103_v13 = vadd.f32 1.0, %v133_v12 }
  0xe0   :  { %134 = vrcp.f32 %v103_v13 }
  0xed   :  { %v135_v14 = vpop.eup %134 }
  0xee   :  { %107 = vst.msk [vmem:[%s182_s3] sm:$0xff] %vm106_vm2, %v135_v14 }

</bundles_post_ra>
